<compile_context>
chip_gen: v7x
topology: tpu7x:2x2x1
jax: 0.10.0
libtpu: 0.0.40
codegen_flags: <defaults>
</compile_context>

<pallas_src>
import functools
import math

import jax
import jax.numpy as jnp
from jax import lax
from jax.experimental import pallas as pl
from jax.experimental.pallas import tpu as pltpu


def _mhsa_kernel(x_ref, mask_ref,
                 wq_ref, bq_ref, wk_ref, bk_ref, wv_ref, bv_ref,
                 wo_ref, bo_ref,
                 out_ref,
                 k_scratch, v_scratch, ctx_scratch,
                 *, num_heads, head_size, q_tile):
    """Grid = (B, n_q_tiles); one (batch, query-tile) step per invocation."""
    qi = pl.program_id(1)
    x_tile = x_ref[0]                                   # (TQ, E) bf16

    # Reset the K/V prefix at the start of each batch element so columns not
    # yet written for this batch are exact zeros (they are masked by the causal
    # bias anyway, but this guarantees no NaN/Inf garbage from uninitialized
    # VMEM can leak through the score dot product).
    @pl.when(qi == 0)
    def _reset_kv():
        k_scratch[...] = jnp.zeros_like(k_scratch)
        v_scratch[...] = jnp.zeros_like(v_scratch)

    # --- incremental K/V projection for this tile's rows (wide MXU matmuls).
    # Causality: keys beyond this tile are never needed at this step.
    k_tile = jnp.dot(x_tile, wk_ref[...],
                     preferred_element_type=jnp.float32) + bk_ref[...]   # (TQ, H*D)
    v_tile = jnp.dot(x_tile, wv_ref[...],
                     preferred_element_type=jnp.float32) + bv_ref[...]
    row0 = qi * q_tile
    start = pl.multiple_of(row0, q_tile)
    k_scratch[pl.ds(start, q_tile), :] = k_tile.astype(k_scratch.dtype)
    v_scratch[pl.ds(start, q_tile), :] = v_tile.astype(v_scratch.dtype)

    # --- Q projection for this tile; 1/sqrt(D) folded into q. ---
    scale = jnp.float32(1.0 / math.sqrt(head_size))
    q = (jnp.dot(x_tile, wq_ref[...],
                 preferred_element_type=jnp.float32) + bq_ref[...]) * scale
    q = q.astype(jnp.bfloat16)                          # (TQ, H*D)

    k = k_scratch[...]                                  # (S_pad, H*D) bf16
    v = v_scratch[...]                                  # (S_pad, H*D) bf16
    seq_len = k.shape[0]

    # --- combined causal + key-padding additive bias (finite: no NaN). ---
    row = row0 + lax.broadcasted_iota(jnp.int32, (q_tile, seq_len), 0)
    col = lax.broadcasted_iota(jnp.int32, (q_tile, seq_len), 1)
    keep = jnp.logical_and(col <= row, mask_ref[0] != 0)        # (TQ, S_pad)
    bias = jnp.where(keep, jnp.float32(0.0), jnp.float32(-1e30))

    # --- per-head attention; head outputs go straight into ctx scratch. ---
    # TODO(synk): for long S, bound score/PV matmuls to the causal key prefix
    # with a key-tile fori_loop (halves attention MXU and exp work).
    D = head_size
    for h in range(num_heads):
        qh = q[:, h * D:(h + 1) * D]                    # (TQ, D)
        kh = k[:, h * D:(h + 1) * D]                    # (S_pad, D)
        vh = v[:, h * D:(h + 1) * D]                    # (S_pad, D)
        # Contract the last dims of both operands: no per-head XLU transpose.
        s = lax.dot_general(qh, kh, (((1,), (1,)), ((), ())),
                            preferred_element_type=jnp.float32) + bias   # (TQ, S_pad)
        m = jnp.max(s, axis=-1, keepdims=True)
        p = jnp.exp(s - m)
        denom = jnp.sum(p, axis=-1, keepdims=True)
        head_out = jnp.dot(p.astype(jnp.bfloat16), vh,
                           preferred_element_type=jnp.float32)           # (TQ, D)
        # Deferred normalization: D multiplies instead of S_pad, recip on EUP.
        head_out = head_out * pl.reciprocal(denom, approx=True)
        ctx_scratch[:, h * D:(h + 1) * D] = head_out.astype(ctx_scratch.dtype)

    # --- single dense output projection (concat + Linear in one matmul). ---
    out = jnp.dot(ctx_scratch[...], wo_ref[...],
                  preferred_element_type=jnp.float32) + bo_ref[...]      # (TQ, E)
    out_ref[0] = out.astype(out_ref.dtype)


def _round_up(x, m):
    return ((x + m - 1) // m) * m


def _tpu_vmem_capacity():
    try:
        return int(pltpu.get_tpu_info().vmem_capacity_bytes)
    except Exception:
        return None


def masked_mhsa_pallas(x, mask, params):
    """x: (B, S, E) f32, mask: (B, S) f32/int (1 = keep key). Returns (B, S, E) f32."""
    B, S, E = x.shape
    wq = params["wq"]                  # (H, E, D)
    H, _, D = wq.shape
    HD = H * D

    # Stack per-head weights head-major along the output (lane) dim: (E, H*D).
    wq_s = jnp.transpose(wq, (1, 0, 2)).reshape(E, HD).astype(jnp.bfloat16)
    wk_s = jnp.transpose(params["wk"], (1, 0, 2)).reshape(E, HD).astype(jnp.bfloat16)
    wv_s = jnp.transpose(params["wv"], (1, 0, 2)).reshape(E, HD).astype(jnp.bfloat16)
    bq_s = params["bq"].reshape(1, HD).astype(jnp.float32)
    bk_s = params["bk"].reshape(1, HD).astype(jnp.float32)
    bv_s = params["bv"].reshape(1, HD).astype(jnp.float32)
    wo_s = params["wo"].reshape(HD, E).astype(jnp.bfloat16)               # (H*D, E)
    bo_s = params["bo"].reshape(1, E).astype(jnp.float32)

    # Generation-aware VMEM budget and query-tile target.
    cap = _tpu_vmem_capacity()
    if cap is None:
        vmem_limit = 48 * 1024 * 1024          # safe on every generation (incl. v7x 64 MiB)
        tq_target = 256
    else:
        vmem_limit = (cap * 3) // 4            # ~48 MiB on v7x, ~96 MiB on v5e/v6e
        tq_target = 512 if cap >= (96 << 20) else 256

    # TQ: multiple of 16 (bf16 sublane packing); pad S up to a multiple of TQ
    # with masked rows instead of falling back to TQ = S.
    TQ = tq_target if S > tq_target else _round_up(S, 16)
    S_pad = _round_up(S, TQ)
    n_q = S_pad // TQ

    x_bf = x.astype(jnp.bfloat16)
    mask3 = mask.astype(jnp.float32).reshape(B, 1, S)
    if S_pad != S:
        x_bf = jnp.pad(x_bf, ((0, 0), (0, S_pad - S), (0, 0)))
        mask3 = jnp.pad(mask3, ((0, 0), (0, 0), (0, S_pad - S)))   # padded keys masked out

    full2 = lambda b, qi: (0, 0)
    # TODO(synk): single-buffer these constant-index weight blocks with
    # pipeline_mode=pl.Buffered(1) once that path is available everywhere.
    grid_spec = pltpu.PrefetchScalarGridSpec(
        num_scalar_prefetch=0,
        grid=(B, n_q),
        in_specs=[
            pl.BlockSpec((1, TQ, E), lambda b, qi: (b, qi, 0)),       # x (query tile)
            pl.BlockSpec((1, 1, S_pad), lambda b, qi: (b, 0, 0)),     # key mask
            pl.BlockSpec((E, HD), full2), pl.BlockSpec((1, HD), full2),   # wq, bq
            pl.BlockSpec((E, HD), full2), pl.BlockSpec((1, HD), full2),   # wk, bk
            pl.BlockSpec((E, HD), full2), pl.BlockSpec((1, HD), full2),   # wv, bv
            pl.BlockSpec((HD, E), full2), pl.BlockSpec((1, E), full2),    # wo, bo
        ],
        out_specs=pl.BlockSpec((1, TQ, E), lambda b, qi: (b, qi, 0)),
        scratch_shapes=[
            pltpu.VMEM((S_pad, HD), jnp.bfloat16),   # K prefix, carried across q tiles
            pltpu.VMEM((S_pad, HD), jnp.bfloat16),   # V prefix, carried across q tiles
            pltpu.VMEM((TQ, HD), jnp.bfloat16),      # per-tile concatenated head outputs
        ],
    )

    kernel = functools.partial(_mhsa_kernel, num_heads=H, head_size=D, q_tile=TQ)

    flops = 2 * B * S_pad * (3 * E * HD + 2 * S_pad * HD + HD * E)
    bytes_accessed = (B * S_pad * E * 2                 # x (bf16), read once per tile
                      + B * S_pad * 4 * n_q             # mask, re-read per query tile
                      + (3 * E * HD + HD * E) * 2 + (3 * HD + E) * 4   # weights/biases
                      + B * S_pad * E * 4)              # output, f32
    cost = pl.CostEstimate(flops=flops,
                           transcendentals=B * H * S_pad * S_pad,
                           bytes_accessed=bytes_accessed)

    # TODO(synk): on v7x with small B, the q-tile axis could also be made
    # core-parallel by hoisting the K/V projection out of the scratch carry.
    out = pl.pallas_call(
        kernel,
        out_shape=jax.ShapeDtypeStruct((B, S_pad, E), jnp.float32),
        grid_spec=grid_spec,
        compiler_params=pltpu.CompilerParams(
            dimension_semantics=("parallel", "arbitrary"),
            vmem_limit_bytes=vmem_limit),
        cost_estimate=cost,
    )(x_bf, mask3, wq_s, bq_s, wk_s, bk_s, wv_s, bv_s, wo_s, bo_s)

    return out[:, :S, :]


def masked_mhsa_reference(x, mask, params):
    """Pure-JAX f32 reference matching the PyTorch forward (non-flash path)."""
    H, E, D = params["wq"].shape
    outs = []
    for h in range(H):
        q = x @ params["wq"][h] + params["bq"][h]     # (B,S,D)
        k = x @ params["wk"][h] + params["bk"][h]
        v = x @ params["wv"][h] + params["bv"][h]
        scores = jnp.einsum("bqd,bkd->bqk", q, k) / math.sqrt(D)
        S = x.shape[1]
        causal = jnp.tril(jnp.ones((S, S)))
        scores = jnp.where(causal == 0, -jnp.inf, scores)
        scores = jnp.where(mask[:, None, :] == 0, -jnp.inf, scores)
        attn = jax.nn.softmax(scores, axis=-1)
        outs.append(jnp.einsum("bqk,bkd->bqd", attn, v))
    concat = jnp.concatenate(outs, axis=2)            # (B, S, H*D)
    wo_full = params["wo"].reshape(H * D, E)          # (H*D, E)
    return concat @ wo_full + params["bo"]


def init_params(key, embedding_size, number_of_heads):
    E = embedding_size
    H = number_of_heads
    D = E // H
    ks = jax.random.split(key, 8)
    lim_in = 1.0 / math.sqrt(E)
    lim_out = 1.0 / math.sqrt(H * D)
    return {
        "wq": jax.random.uniform(ks[0], (H, E, D), jnp.float32, -lim_in, lim_in),
        "bq": jax.random.uniform(ks[1], (H, D), jnp.float32, -lim_in, lim_in),
        "wk": jax.random.uniform(ks[2], (H, E, D), jnp.float32, -lim_in, lim_in),
        "bk": jax.random.uniform(ks[3], (H, D), jnp.float32, -lim_in, lim_in),
        "wv": jax.random.uniform(ks[4], (H, E, D), jnp.float32, -lim_in, lim_in),
        "bv": jax.random.uniform(ks[5], (H, D), jnp.float32, -lim_in, lim_in),
        # output Linear(H*D, E): stored per-head as (H, D, E) == weight.T reshaped
        "wo": jax.random.uniform(ks[6], (H, D, E), jnp.float32, -lim_out, lim_out),
        "bo": jax.random.uniform(ks[7], (E,), jnp.float32, -lim_out, lim_out),
    }


if __name__ == "__main__":
    B, S, E, H = 2, 8, 32, 4   # head_size D = 8

    key = jax.random.PRNGKey(0)
    kx, kp = jax.random.split(key)
    x = jax.random.normal(kx, (B, S, E), jnp.float32)
    # padding mask over keys: last two positions of each sequence are masked out
    mask = jnp.ones((B, S), jnp.float32).at[:, -2:].set(0.0)

    params = init_params(kp, E, H)

    out = masked_mhsa_pallas(x, mask, params)
    out = jax.block_until_ready(out)

    ref = masked_mhsa_reference(x, mask, params)
    assert out.shape == (B, S, E)
    # bf16 matmul operands + approx reciprocal -> relaxed tolerance vs f32 reference
    assert jnp.allclose(out, ref, atol=5e-2, rtol=5e-2), "mismatch vs reference"

    print("KERNEL_OK")
</pallas_src>

<mosaic_0001>
module attributes {stable_mosaic.version = 11 : i64} {
  func.func @_mhsa_kernel(%arg0: i32, %arg1: i32, %arg2: memref<1x16x32xbf16, #tpu.memory_space<vmem>>, %arg3: memref<1x1x16xf32, #tpu.memory_space<vmem>>, %arg4: memref<32x32xbf16, #tpu.memory_space<vmem>>, %arg5: memref<1x32xf32, #tpu.memory_space<vmem>>, %arg6: memref<32x32xbf16, #tpu.memory_space<vmem>>, %arg7: memref<1x32xf32, #tpu.memory_space<vmem>>, %arg8: memref<32x32xbf16, #tpu.memory_space<vmem>>, %arg9: memref<1x32xf32, #tpu.memory_space<vmem>>, %arg10: memref<32x32xbf16, #tpu.memory_space<vmem>>, %arg11: memref<1x32xf32, #tpu.memory_space<vmem>>, %arg12: memref<1x16x32xf32, #tpu.memory_space<vmem>>, %arg13: memref<16x32xbf16, #tpu.memory_space<vmem>>, %arg14: memref<16x32xbf16, #tpu.memory_space<vmem>>, %arg15: memref<16x32xbf16, #tpu.memory_space<vmem>>) attributes {dimension_semantics = [#tpu.dimension_semantics<parallel>, #tpu.dimension_semantics<arbitrary>], iteration_bounds = array<i64: 2, 1>, scalar_prefetch = 0 : i64, scratch_operands = 3 : i64, tpu.core_type = #tpu.core_type<tc>, window_params = [{transform_indices = @transform_0, window_bounds = array<i64: 1, 16, 32>}, {transform_indices = @transform_1, window_bounds = array<i64: 1, 1, 16>}, {pipeline_mode = #tpu.pipeline_mode<synchronous>, transform_indices = @transform_2, window_bounds = array<i64: 32, 32>}, {pipeline_mode = #tpu.pipeline_mode<synchronous>, transform_indices = @transform_3, window_bounds = array<i64: 1, 32>}, {pipeline_mode = #tpu.pipeline_mode<synchronous>, transform_indices = @transform_4, window_bounds = array<i64: 32, 32>}, {pipeline_mode = #tpu.pipeline_mode<synchronous>, transform_indices = @transform_5, window_bounds = array<i64: 1, 32>}, {pipeline_mode = #tpu.pipeline_mode<synchronous>, transform_indices = @transform_6, window_bounds = array<i64: 32, 32>}, {pipeline_mode = #tpu.pipeline_mode<synchronous>, transform_indices = @transform_7, window_bounds = array<i64: 1, 32>}, {pipeline_mode = #tpu.pipeline_mode<synchronous>, transform_indices = @transform_8, window_bounds = array<i64: 32, 32>}, {pipeline_mode = #tpu.pipeline_mode<synchronous>, transform_indices = @transform_9, window_bounds = array<i64: 1, 32>}, {transform_indices = @transform_10, window_bounds = array<i64: 1, 16, 32>}]} {
    %c0 = arith.constant 0 : index
    %c0_0 = arith.constant 0 : index
    %c0_1 = arith.constant 0 : index
    %0 = vector.load %arg2[%c0, %c0_0, %c0_1] : memref<1x16x32xbf16, #tpu.memory_space<vmem>>, vector<1x16x32xbf16>
    %1 = vector.shape_cast %0 : vector<1x16x32xbf16> to vector<16x32xbf16>
    %c0_i32 = arith.constant 0 : i32
    %2 = arith.cmpi eq, %arg1, %c0_i32 : i32
    %3 = arith.extui %2 : i1 to i32
    %c0_i32_2 = arith.constant 0 : i32
    %4 = arith.cmpi ne, %3, %c0_i32_2 : i32
    scf.if %4 {
      %cst_61 = arith.constant 0.000000e+00 : bf16
      %132 = vector.broadcast %cst_61 : bf16 to vector<16x32xbf16>
      %c0_62 = arith.constant 0 : index
      %c0_63 = arith.constant 0 : index
      %133 = vector.load %arg13[%c0_62, %c0_63] : memref<16x32xbf16, #tpu.memory_space<vmem>>, vector<16x32xbf16>
      tpu.vector_store %arg13[%c0_62, %c0_63], %132 {strides = array<i32>} : memref<16x32xbf16, #tpu.memory_space<vmem>>, vector<16x32xbf16>,
      %cst_64 = arith.constant 0.000000e+00 : bf16
      %134 = vector.broadcast %cst_64 : bf16 to vector<16x32xbf16>
      %c0_65 = arith.constant 0 : index
      %c0_66 = arith.constant 0 : index
      %135 = vector.load %arg14[%c0_65, %c0_66] : memref<16x32xbf16, #tpu.memory_space<vmem>>, vector<16x32xbf16>
      tpu.vector_store %arg14[%c0_65, %c0_66], %134 {strides = array<i32>} : memref<16x32xbf16, #tpu.memory_space<vmem>>, vector<16x32xbf16>,
    } else {
    }
    %c0_3 = arith.constant 0 : index
    %c0_4 = arith.constant 0 : index
    %5 = vector.load %arg6[%c0_3, %c0_4] : memref<32x32xbf16, #tpu.memory_space<vmem>>, vector<32x32xbf16>
    %cst = arith.constant dense<0.000000e+00> : vector<16x32xf32>
    %6 = tpu.matmul %1, %5, %cst {dimension_numbers = #tpu.dot_dimension_numbers<[1], [0], [0], [1], [0, 0, 1, 1], [], []>} : vector<16x32xbf16>, vector<32x32xbf16>, vector<16x32xf32> -> vector<16x32xf32>
    %c0_5 = arith.constant 0 : index
    %c0_6 = arith.constant 0 : index
    %7 = vector.load %arg7[%c0_5, %c0_6] : memref<1x32xf32, #tpu.memory_space<vmem>>, vector<1x32xf32>
    %8 = vector.broadcast %7 : vector<1x32xf32> to vector<16x32xf32>
    %9 = arith.addf %6, %8 : vector<16x32xf32>
    %c0_7 = arith.constant 0 : index
    %c0_8 = arith.constant 0 : index
    %10 = vector.load %arg8[%c0_7, %c0_8] : memref<32x32xbf16, #tpu.memory_space<vmem>>, vector<32x32xbf16>
    %cst_9 = arith.constant dense<0.000000e+00> : vector<16x32xf32>
    %11 = tpu.matmul %1, %10, %cst_9 {dimension_numbers = #tpu.dot_dimension_numbers<[1], [0], [0], [1], [0, 0, 1, 1], [], []>} : vector<16x32xbf16>, vector<32x32xbf16>, vector<16x32xf32> -> vector<16x32xf32>
    %c0_10 = arith.constant 0 : index
    %c0_11 = arith.constant 0 : index
    %12 = vector.load %arg9[%c0_10, %c0_11] : memref<1x32xf32, #tpu.memory_space<vmem>>, vector<1x32xf32>
    %13 = vector.broadcast %12 : vector<1x32xf32> to vector<16x32xf32>
    %14 = arith.addf %11, %13 : vector<16x32xf32>
    %c16_i32 = arith.constant 16 : i32
    %15 = arith.muli %arg1, %c16_i32 : i32
    %16 = tpu.assume_multiple %15, 16 : i32
    %17 = arith.truncf %9 : vector<16x32xf32> to vector<16x32xbf16>
    %18 = arith.index_cast %16 : i32 to index
    %c0_12 = arith.constant 0 : index
    %19 = vector.load %arg13[%18, %c0_12] : memref<16x32xbf16, #tpu.memory_space<vmem>>, vector<16x32xbf16>
    tpu.vector_store %arg13[%18, %c0_12], %17 {strides = array<i32>} : memref<16x32xbf16, #tpu.memory_space<vmem>>, vector<16x32xbf16>,
    %20 = arith.truncf %14 : vector<16x32xf32> to vector<16x32xbf16>
    %21 = arith.index_cast %16 : i32 to index
    %c0_13 = arith.constant 0 : index
    %22 = vector.load %arg14[%21, %c0_13] : memref<16x32xbf16, #tpu.memory_space<vmem>>, vector<16x32xbf16>
    tpu.vector_store %arg14[%21, %c0_13], %20 {strides = array<i32>} : memref<16x32xbf16, #tpu.memory_space<vmem>>, vector<16x32xbf16>,
    %c0_14 = arith.constant 0 : index
    %c0_15 = arith.constant 0 : index
    %23 = vector.load %arg4[%c0_14, %c0_15] : memref<32x32xbf16, #tpu.memory_space<vmem>>, vector<32x32xbf16>
    %cst_16 = arith.constant dense<0.000000e+00> : vector<16x32xf32>
    %24 = tpu.matmul %1, %23, %cst_16 {dimension_numbers = #tpu.dot_dimension_numbers<[1], [0], [0], [1], [0, 0, 1, 1], [], []>} : vector<16x32xbf16>, vector<32x32xbf16>, vector<16x32xf32> -> vector<16x32xf32>
    %c0_17 = arith.constant 0 : index
    %c0_18 = arith.constant 0 : index
    %25 = vector.load %arg5[%c0_17, %c0_18] : memref<1x32xf32, #tpu.memory_space<vmem>>, vector<1x32xf32>
    %26 = vector.broadcast %25 : vector<1x32xf32> to vector<16x32xf32>
    %27 = arith.addf %24, %26 : vector<16x32xf32>
    %cst_19 = arith.constant 0.353553385 : f32
    %28 = vector.broadcast %cst_19 : f32 to vector<16x32xf32>
    %29 = arith.mulf %27, %28 : vector<16x32xf32>
    %30 = arith.truncf %29 : vector<16x32xf32> to vector<16x32xbf16>
    %c0_20 = arith.constant 0 : index
    %c0_21 = arith.constant 0 : index
    %31 = vector.load %arg13[%c0_20, %c0_21] : memref<16x32xbf16, #tpu.memory_space<vmem>>, vector<16x32xbf16>
    %c0_22 = arith.constant 0 : index
    %c0_23 = arith.constant 0 : index
    %32 = vector.load %arg14[%c0_22, %c0_23] : memref<16x32xbf16, #tpu.memory_space<vmem>>, vector<16x32xbf16>
    %33 = tpu.iota {dimensions = array<i32: 0>} : vector<16x16xi32>
    %34 = vector.broadcast %15 : i32 to vector<16x16xi32>
    %35 = arith.addi %34, %33 : vector<16x16xi32>
    %36 = tpu.iota {dimensions = array<i32: 1>} : vector<16x16xi32>
    %37 = arith.cmpi sle, %36, %35 : vector<16x16xi32>
    %c0_24 = arith.constant 0 : index
    %c0_25 = arith.constant 0 : index
    %c0_26 = arith.constant 0 : index
    %38 = vector.load %arg3[%c0_24, %c0_25, %c0_26] : memref<1x1x16xf32, #tpu.memory_space<vmem>>, vector<1x1x16xf32>
    %39 = vector.shape_cast %38 : vector<1x1x16xf32> to vector<1x16xf32>
    %cst_27 = arith.constant 0.000000e+00 : f32
    %40 = vector.broadcast %cst_27 : f32 to vector<1x16xf32>
    %41 = arith.cmpf one, %39, %40 : vector<1x16xf32>
    %42 = vector.broadcast %41 : vector<1x16xi1> to vector<16x16xi1>
    %43 = arith.andi %37, %42 : vector<16x16xi1>
    %cst_28 = arith.constant 0.000000e+00 : f32
    %cst_29 = arith.constant -1.000000e+30 : f32
    %44 = vector.broadcast %cst_28 : f32 to vector<16x16xf32>
    %45 = vector.broadcast %cst_29 : f32 to vector<16x16xf32>
    %46 = arith.select %43, %44, %45 : vector<16x16xi1>, vector<16x16xf32>
    %47 = vector.extract_strided_slice %30 {offsets = [0, 0], sizes = [16, 8], strides = [1, 1]} : vector<16x32xbf16> to vector<16x8xbf16>
    %48 = vector.extract_strided_slice %31 {offsets = [0, 0], sizes = [16, 8], strides = [1, 1]} : vector<16x32xbf16> to vector<16x8xbf16>
    %49 = vector.extract_strided_slice %32 {offsets = [0, 0], sizes = [16, 8], strides = [1, 1]} : vector<16x32xbf16> to vector<16x8xbf16>
    %cst_30 = arith.constant dense<0.000000e+00> : vector<16x16xf32>
    %50 = tpu.matmul %47, %48, %cst_30 {dimension_numbers = #tpu.dot_dimension_numbers<[1], [1], [0], [0], [0, 0, 1, 0], [], []>} : vector<16x8xbf16>, vector<16x8xbf16>, vector<16x16xf32> -> vector<16x16xf32>
    %51 = arith.addf %50, %46 : vector<16x16xf32>
    %cst_31 = arith.constant dense<0xFF800000> : vector<16xf32>
    %52 = vector.multi_reduction <maximumf>, %51, %cst_31 [1] : vector<16x16xf32> to vector<16xf32>
    %53 = vector.shape_cast %52 : vector<16xf32> to vector<16x1xf32>
    %54 = vector.broadcast %53 : vector<16x1xf32> to vector<16x16xf32>
    %55 = arith.subf %51, %54 : vector<16x16xf32>
    %56 = math.exp %55 : vector<16x16xf32>
    %cst_32 = arith.constant dense<0.000000e+00> : vector<16xf32>
    %57 = vector.multi_reduction <add>, %56, %cst_32 [1] : vector<16x16xf32> to vector<16xf32>
    %58 = vector.shape_cast %57 : vector<16xf32> to vector<16x1xf32>
    %59 = arith.truncf %56 : vector<16x16xf32> to vector<16x16xbf16>
    %cst_33 = arith.constant dense<0.000000e+00> : vector<16x8xf32>
    %60 = tpu.matmul %59, %49, %cst_33 {dimension_numbers = #tpu.dot_dimension_numbers<[1], [0], [0], [1], [0, 0, 1, 1], [], []>} : vector<16x16xbf16>, vector<16x8xbf16>, vector<16x8xf32> -> vector<16x8xf32>
    %61 = tpu.reciprocal %58 {approx = true} : vector<16x1xf32> -> vector<16x1xf32>
    %62 = vector.broadcast %61 : vector<16x1xf32> to vector<16x8xf32>
    %63 = arith.mulf %60, %62 : vector<16x8xf32>
    %64 = arith.truncf %63 : vector<16x8xf32> to vector<16x8xbf16>
    %c0_34 = arith.constant 0 : index
    %c0_35 = arith.constant 0 : index
    %65 = vector.load %arg15[%c0_34, %c0_35] : memref<16x32xbf16, #tpu.memory_space<vmem>>, vector<16x8xbf16>
    tpu.vector_store %arg15[%c0_34, %c0_35], %64 {strides = array<i32>} : memref<16x32xbf16, #tpu.memory_space<vmem>>, vector<16x8xbf16>,
    %66 = vector.extract_strided_slice %30 {offsets = [0, 8], sizes = [16, 8], strides = [1, 1]} : vector<16x32xbf16> to vector<16x8xbf16>
    %67 = vector.extract_strided_slice %31 {offsets = [0, 8], sizes = [16, 8], strides = [1, 1]} : vector<16x32xbf16> to vector<16x8xbf16>
    %68 = vector.extract_strided_slice %32 {offsets = [0, 8], sizes = [16, 8], strides = [1, 1]} : vector<16x32xbf16> to vector<16x8xbf16>
    %cst_36 = arith.constant dense<0.000000e+00> : vector<16x16xf32>
    %69 = tpu.matmul %66, %67, %cst_36 {dimension_numbers = #tpu.dot_dimension_numbers<[1], [1], [0], [0], [0, 0, 1, 0], [], []>} : vector<16x8xbf16>, vector<16x8xbf16>, vector<16x16xf32> -> vector<16x16xf32>
    %70 = arith.addf %69, %46 : vector<16x16xf32>
    %cst_37 = arith.constant dense<0xFF800000> : vector<16xf32>
    %71 = vector.multi_reduction <maximumf>, %70, %cst_37 [1] : vector<16x16xf32> to vector<16xf32>
    %72 = vector.shape_cast %71 : vector<16xf32> to vector<16x1xf32>
    %73 = vector.broadcast %72 : vector<16x1xf32> to vector<16x16xf32>
    %74 = arith.subf %70, %73 : vector<16x16xf32>
    %75 = math.exp %74 : vector<16x16xf32>
    %cst_38 = arith.constant dense<0.000000e+00> : vector<16xf32>
    %76 = vector.multi_reduction <add>, %75, %cst_38 [1] : vector<16x16xf32> to vector<16xf32>
    %77 = vector.shape_cast %76 : vector<16xf32> to vector<16x1xf32>
    %78 = arith.truncf %75 : vector<16x16xf32> to vector<16x16xbf16>
    %cst_39 = arith.constant dense<0.000000e+00> : vector<16x8xf32>
    %79 = tpu.matmul %78, %68, %cst_39 {dimension_numbers = #tpu.dot_dimension_numbers<[1], [0], [0], [1], [0, 0, 1, 1], [], []>} : vector<16x16xbf16>, vector<16x8xbf16>, vector<16x8xf32> -> vector<16x8xf32>
    %80 = tpu.reciprocal %77 {approx = true} : vector<16x1xf32> -> vector<16x1xf32>
    %81 = vector.broadcast %80 : vector<16x1xf32> to vector<16x8xf32>
    %82 = arith.mulf %79, %81 : vector<16x8xf32>
    %83 = arith.truncf %82 : vector<16x8xf32> to vector<16x8xbf16>
    %c0_40 = arith.constant 0 : index
    %c8 = arith.constant 8 : index
    %84 = vector.load %arg15[%c0_40, %c8] : memref<16x32xbf16, #tpu.memory_space<vmem>>, vector<16x8xbf16>
    tpu.vector_store %arg15[%c0_40, %c8], %83 {strides = array<i32>} : memref<16x32xbf16, #tpu.memory_space<vmem>>, vector<16x8xbf16>,
    %85 = vector.extract_strided_slice %30 {offsets = [0, 16], sizes = [16, 8], strides = [1, 1]} : vector<16x32xbf16> to vector<16x8xbf16>
    %86 = vector.extract_strided_slice %31 {offsets = [0, 16], sizes = [16, 8], strides = [1, 1]} : vector<16x32xbf16> to vector<16x8xbf16>
    %87 = vector.extract_strided_slice %32 {offsets = [0, 16], sizes = [16, 8], strides = [1, 1]} : vector<16x32xbf16> to vector<16x8xbf16>
    %cst_41 = arith.constant dense<0.000000e+00> : vector<16x16xf32>
    %88 = tpu.matmul %85, %86, %cst_41 {dimension_numbers = #tpu.dot_dimension_numbers<[1], [1], [0], [0], [0, 0, 1, 0], [], []>} : vector<16x8xbf16>, vector<16x8xbf16>, vector<16x16xf32> -> vector<16x16xf32>
    %89 = arith.addf %88, %46 : vector<16x16xf32>
    %cst_42 = arith.constant dense<0xFF800000> : vector<16xf32>
    %90 = vector.multi_reduction <maximumf>, %89, %cst_42 [1] : vector<16x16xf32> to vector<16xf32>
    %91 = vector.shape_cast %90 : vector<16xf32> to vector<16x1xf32>
    %92 = vector.broadcast %91 : vector<16x1xf32> to vector<16x16xf32>
    %93 = arith.subf %89, %92 : vector<16x16xf32>
    %94 = math.exp %93 : vector<16x16xf32>
    %cst_43 = arith.constant dense<0.000000e+00> : vector<16xf32>
    %95 = vector.multi_reduction <add>, %94, %cst_43 [1] : vector<16x16xf32> to vector<16xf32>
    %96 = vector.shape_cast %95 : vector<16xf32> to vector<16x1xf32>
    %97 = arith.truncf %94 : vector<16x16xf32> to vector<16x16xbf16>
    %cst_44 = arith.constant dense<0.000000e+00> : vector<16x8xf32>
    %98 = tpu.matmul %97, %87, %cst_44 {dimension_numbers = #tpu.dot_dimension_numbers<[1], [0], [0], [1], [0, 0, 1, 1], [], []>} : vector<16x16xbf16>, vector<16x8xbf16>, vector<16x8xf32> -> vector<16x8xf32>
    %99 = tpu.reciprocal %96 {approx = true} : vector<16x1xf32> -> vector<16x1xf32>
    %100 = vector.broadcast %99 : vector<16x1xf32> to vector<16x8xf32>
    %101 = arith.mulf %98, %100 : vector<16x8xf32>
    %102 = arith.truncf %101 : vector<16x8xf32> to vector<16x8xbf16>
    %c0_45 = arith.constant 0 : index
    %c16 = arith.constant 16 : index
    %103 = vector.load %arg15[%c0_45, %c16] : memref<16x32xbf16, #tpu.memory_space<vmem>>, vector<16x8xbf16>
    tpu.vector_store %arg15[%c0_45, %c16], %102 {strides = array<i32>} : memref<16x32xbf16, #tpu.memory_space<vmem>>, vector<16x8xbf16>,
    %104 = vector.extract_strided_slice %30 {offsets = [0, 24], sizes = [16, 8], strides = [1, 1]} : vector<16x32xbf16> to vector<16x8xbf16>
    %105 = vector.extract_strided_slice %31 {offsets = [0, 24], sizes = [16, 8], strides = [1, 1]} : vector<16x32xbf16> to vector<16x8xbf16>
    %106 = vector.extract_strided_slice %32 {offsets = [0, 24], sizes = [16, 8], strides = [1, 1]} : vector<16x32xbf16> to vector<16x8xbf16>
    %cst_46 = arith.constant dense<0.000000e+00> : vector<16x16xf32>
    %107 = tpu.matmul %104, %105, %cst_46 {dimension_numbers = #tpu.dot_dimension_numbers<[1], [1], [0], [0], [0, 0, 1, 0], [], []>} : vector<16x8xbf16>, vector<16x8xbf16>, vector<16x16xf32> -> vector<16x16xf32>
    %108 = arith.addf %107, %46 : vector<16x16xf32>
    %cst_47 = arith.constant dense<0xFF800000> : vector<16xf32>
    %109 = vector.multi_reduction <maximumf>, %108, %cst_47 [1] : vector<16x16xf32> to vector<16xf32>
    %110 = vector.shape_cast %109 : vector<16xf32> to vector<16x1xf32>
    %111 = vector.broadcast %110 : vector<16x1xf32> to vector<16x16xf32>
    %112 = arith.subf %108, %111 : vector<16x16xf32>
    %113 = math.exp %112 : vector<16x16xf32>
    %cst_48 = arith.constant dense<0.000000e+00> : vector<16xf32>
    %114 = vector.multi_reduction <add>, %113, %cst_48 [1] : vector<16x16xf32> to vector<16xf32>
    %115 = vector.shape_cast %114 : vector<16xf32> to vector<16x1xf32>
    %116 = arith.truncf %113 : vector<16x16xf32> to vector<16x16xbf16>
    %cst_49 = arith.constant dense<0.000000e+00> : vector<16x8xf32>
    %117 = tpu.matmul %116, %106, %cst_49 {dimension_numbers = #tpu.dot_dimension_numbers<[1], [0], [0], [1], [0, 0, 1, 1], [], []>} : vector<16x16xbf16>, vector<16x8xbf16>, vector<16x8xf32> -> vector<16x8xf32>
    %118 = tpu.reciprocal %115 {approx = true} : vector<16x1xf32> -> vector<16x1xf32>
    %119 = vector.broadcast %118 : vector<16x1xf32> to vector<16x8xf32>
    %120 = arith.mulf %117, %119 : vector<16x8xf32>
    %121 = arith.truncf %120 : vector<16x8xf32> to vector<16x8xbf16>
    %c0_50 = arith.constant 0 : index
    %c24 = arith.constant 24 : index
    %122 = vector.load %arg15[%c0_50, %c24] : memref<16x32xbf16, #tpu.memory_space<vmem>>, vector<16x8xbf16>
    tpu.vector_store %arg15[%c0_50, %c24], %121 {strides = array<i32>} : memref<16x32xbf16, #tpu.memory_space<vmem>>, vector<16x8xbf16>,
    %c0_51 = arith.constant 0 : index
    %c0_52 = arith.constant 0 : index
    %123 = vector.load %arg15[%c0_51, %c0_52] : memref<16x32xbf16, #tpu.memory_space<vmem>>, vector<16x32xbf16>
    %c0_53 = arith.constant 0 : index
    %c0_54 = arith.constant 0 : index
    %124 = vector.load %arg10[%c0_53, %c0_54] : memref<32x32xbf16, #tpu.memory_space<vmem>>, vector<32x32xbf16>
    %cst_55 = arith.constant dense<0.000000e+00> : vector<16x32xf32>
    %125 = tpu.matmul %123, %124, %cst_55 {dimension_numbers = #tpu.dot_dimension_numbers<[1], [0], [0], [1], [0, 0, 1, 1], [], []>} : vector<16x32xbf16>, vector<32x32xbf16>, vector<16x32xf32> -> vector<16x32xf32>
    %c0_56 = arith.constant 0 : index
    %c0_57 = arith.constant 0 : index
    %126 = vector.load %arg11[%c0_56, %c0_57] : memref<1x32xf32, #tpu.memory_space<vmem>>, vector<1x32xf32>
    %127 = vector.broadcast %126 : vector<1x32xf32> to vector<16x32xf32>
    %128 = arith.addf %125, %127 : vector<16x32xf32>
    %c0_58 = arith.constant 0 : index
    %c0_59 = arith.constant 0 : index
    %c0_60 = arith.constant 0 : index
    %129 = vector.load %arg12[%c0_58, %c0_59, %c0_60] : memref<1x16x32xf32, #tpu.memory_space<vmem>>, vector<1x16x32xf32>
    %130 = vector.shape_cast %129 : vector<1x16x32xf32> to vector<16x32xf32>
    %131 = vector.shape_cast %128 : vector<16x32xf32> to vector<1x16x32xf32>
    tpu.vector_store %arg12[%c0_58, %c0_59, %c0_60], %131 {strides = array<i32>} : memref<1x16x32xf32, #tpu.memory_space<vmem>>, vector<1x16x32xf32>,
    return
  }
  func.func @transform_0(%arg0: i32, %arg1: i32) -> (i32, i32, i32) {
    %c0_i32 = arith.constant 0 : i32
    %c0_i32_0 = arith.constant 0 : i32
    return %arg0, %arg1, %c0_i32 : i32, i32, i32
  }
  func.func @transform_1(%arg0: i32, %arg1: i32) -> (i32, i32, i32) {
    %c0_i32 = arith.constant 0 : i32
    %c0_i32_0 = arith.constant 0 : i32
    %c0_i32_1 = arith.constant 0 : i32
    return %arg0, %c0_i32, %c0_i32_0 : i32, i32, i32
  }
  func.func @transform_2(%arg0: i32, %arg1: i32) -> (i32, i32) {
    %c0_i32 = arith.constant 0 : i32
    %c0_i32_0 = arith.constant 0 : i32
    %c0_i32_1 = arith.constant 0 : i32
    return %c0_i32, %c0_i32_0 : i32, i32
  }
  func.func @transform_3(%arg0: i32, %arg1: i32) -> (i32, i32) {
    %c0_i32 = arith.constant 0 : i32
    %c0_i32_0 = arith.constant 0 : i32
    %c0_i32_1 = arith.constant 0 : i32
    return %c0_i32, %c0_i32_0 : i32, i32
  }
  func.func @transform_4(%arg0: i32, %arg1: i32) -> (i32, i32) {
    %c0_i32 = arith.constant 0 : i32
    %c0_i32_0 = arith.constant 0 : i32
    %c0_i32_1 = arith.constant 0 : i32
    return %c0_i32, %c0_i32_0 : i32, i32
  }
  func.func @transform_5(%arg0: i32, %arg1: i32) -> (i32, i32) {
    %c0_i32 = arith.constant 0 : i32
    %c0_i32_0 = arith.constant 0 : i32
    %c0_i32_1 = arith.constant 0 : i32
    return %c0_i32, %c0_i32_0 : i32, i32
  }
  func.func @transform_6(%arg0: i32, %arg1: i32) -> (i32, i32) {
    %c0_i32 = arith.constant 0 : i32
    %c0_i32_0 = arith.constant 0 : i32
    %c0_i32_1 = arith.constant 0 : i32
    return %c0_i32, %c0_i32_0 : i32, i32
  }
  func.func @transform_7(%arg0: i32, %arg1: i32) -> (i32, i32) {
    %c0_i32 = arith.constant 0 : i32
    %c0_i32_0 = arith.constant 0 : i32
    %c0_i32_1 = arith.constant 0 : i32
    return %c0_i32, %c0_i32_0 : i32, i32
  }
  func.func @transform_8(%arg0: i32, %arg1: i32) -> (i32, i32) {
    %c0_i32 = arith.constant 0 : i32
    %c0_i32_0 = arith.constant 0 : i32
    %c0_i32_1 = arith.constant 0 : i32
    return %c0_i32, %c0_i32_0 : i32, i32
  }
  func.func @transform_9(%arg0: i32, %arg1: i32) -> (i32, i32) {
    %c0_i32 = arith.constant 0 : i32
    %c0_i32_0 = arith.constant 0 : i32
    %c0_i32_1 = arith.constant 0 : i32
    return %c0_i32, %c0_i32_0 : i32, i32
  }
  func.func @transform_10(%arg0: i32, %arg1: i32) -> (i32, i32, i32) {
    %c0_i32 = arith.constant 0 : i32
    %c0_i32_0 = arith.constant 0 : i32
    return %arg0, %arg1, %c0_i32 : i32, i32, i32
  }
}

</mosaic_0001>

<bundles_post_ra>
// kernel: tpu_custom_call.1
= control target key start
LH: loop header
LB: loop body
LE: loop exit
PB: predicated region body
PF: predicated region fallthrough
CT: control target
= control target key end

     0   :  { %s2426_s0 = inlined_call_operand.hbm [shape: bf16[2,16,32], index: 0, kind: input, shape index: {}]   ;;  %s2427_s1 = inlined_call_operand.vmem [shape: f32[2,1,16], index: 1, kind: input, shape index: {}]   ;;  %s2428_s2 = inlined_call_operand.hbm [shape: bf16[32,32], index: 2, kind: input, shape index: {}]   ;;  %s2429_s3 = inlined_call_operand.vmem [shape: f32[1,32], index: 3, kind: input, shape index: {}]   ;;  %s2430_s4 = inlined_call_operand.hbm [shape: bf16[32,32], index: 4, kind: input, shape index: {}]   ;;  %s2431_s5 = inlined_call_operand.vmem [shape: f32[1,32], index: 5, kind: input, shape index: {}]   ;;  %s2432_s6 = inlined_call_operand.vmem [shape: bf16[32,32], index: 6, kind: input, shape index: {}]   ;;  %s2433_s7 = inlined_call_operand.vmem [shape: f32[1,32], index: 7, kind: input, shape index: {}]   ;;  %s2434_s8 = inlined_call_operand.hbm [shape: bf16[32,32], index: 8, kind: input, shape index: {}]   ;;  %s2435_s9 = inlined_call_operand.vmem [shape: f32[1,32], index: 9, kind: input, shape index: {}]   ;;  %s2436_s10 = inlined_call_operand.hbm [shape: f32[2,16,32], index: 10, kind: output, shape index: {}]  }
   0x1   :  { %2445 = sst [smem:[#allocation21_spill]] %s2427_s1 }
   0x2   :  { %2446 = sst [smem:[#allocation22_spill]] %s2433_s7 }
   0x3   :  { %2447 = sst [smem:[#allocation23_spill]] %s2435_s9 }
   0x4   :  { %2448 = sst [smem:[#allocation24_spill]] %s2436_s10 }
   0x5   :  { %15 = vsyncpa [#allocation6], 0 }
   0x6   :  { %17 = vsyncpa [#allocation6 + $0x1], 0 }
   0x7   :  { %18 = vsyncpa [#allocation9], 0 }
   0x8   :  { %19 = vsyncpa [#allocation12], 0 }
   0x9   :  { %20 = vsyncpa [#allocation7], 0 }
   0xa   :  { %22 = vsyncpa [#allocation7 + $0x1], 0  ;;  %s2007_s13 = smov 0   ;;  %s2009_s14 = smov 0  }
   0xb   :  { %s2011_s15 = smov 0   ;;  %s2013_s16 = smov 0  }
   0xc   :  { %s2015_s17 = smov 0   ;;  %s2017_s18 = smov 0  }
   0xd LB: > { %2449 = sst [smem:[#allocation18_spill]] %s1912_s13  ;;  %s1425_s19 = sadd.s32 4294967295, %s1932_s18   ;;  %s1932_s18 = sphi %s2017_s18, %s28_s18   ;;  %s1928_s17 = sphi %s2015_s17, %s2478_s17   ;;  %s1924_s16 = sphi %s2013_s16, %s2477_s16   ;;  %s1920_s15 = sphi %s2011_s15, %s2476_s15   ;;  %s1916_s14 = sphi %s2009_s14, %s2475_s14   ;;  %s1912_s13 = sphi %s2007_s13, %s2474_s13  }
   0xe   : > { %2450 = sst [smem:[#allocation19_spill]] %s1924_s16  ;;  %s1426_s20 = sadd.s32 4294967294, %s1932_s18  }
   0xf   : > { %p62_p0 = scmp.ne.s32.totalorder %s1916_s14, %s1912_s13  ;;  %p2041_p1 = scmp.eq.s32.totalorder %s1425_s19, 0 }
  0x10   : > { %p2045_p2 = scmp.eq.s32.totalorder %s1425_s19, 1  ;;  %p288_p3 = scmp.eq.s32.totalorder %s1426_s20, 1 }
  0x11   : > { %s2451_s21 = scalar_select %p2041_p1, 1, 0 }
  0x12   : > { %s2452_s22 = scalar_select %p2045_p2, 1, 0 }
  0x13   : > { %p2051_p4 = por %p2041_p1, %p62_p0  ;;  %p1427_p5 = scmp.ge.s32.totalorder %s1932_s18, 1 }
  0x14   : > { %p2056_p6 = por %p288_p3, %p62_p0  ;;  %p295_p7 = scmp.lt.s32.totalorder %s1932_s18, 3 }
  0x15   : > { %s2453_s23 = scalar_select %p2051_p4, 1, 0 }
  0x16   : > { %s2454_s24 = scalar_select %p2056_p6, 1, 0 }
  0x17   : > { %p2061_p8 = pnand %p1427_p5, %p295_p7  ;;  %s1934_s26 = smov [#allocation8]  }
  0x18   : > { %2455 = sst [smem:[#allocation20_spill]] %s2454_s24  ;;  %s307_s27 = sshll.u32 %s1934_s26, 4  ;;  %s2065_s27 = int_to_ptr.vmem [resolvable:$true] %s307_s27 }
  0x19   : > { %s2456_s25 = scalar_select %p2061_p8, 1, 0 }
  0x1a   : > { %p1597_p9 = pneg %p2061_p8  ;;  %s1935_s29 = smov [#allocation10]  }
  0x1b   : > { %s323_s30 = sshll.u32 %s1935_s29, 4  ;;  %s1936_s11 = smov [#allocation11]   ;;  %s2076_s30 = int_to_ptr.vmem [resolvable:$true] %s323_s30 }
  0x1c   : > { %p2072_p11 = pnand %p1597_p9, %p2041_p1  ;;  %s2078_s12 = sshll.u32 %s1936_s11, 4  ;;  %s346_s12 = int_to_ptr.vmem [resolvable:$true] %s2078_s12 }
  0x1d   : > { %s1728_s26 = scalar_lea.hbm %s2428_s2, 256 }
  0x1e   : > { %p1729_p12 = scmp.ne.s32.totalorder %s2428_s2, %s1728_s26  ;;  %p2088_p13 = pneg %p2072_p11 }
  0x1f   : > { %p1735_p5 = scmp.lt.u32.totalorder %s1728_s26, %s2428_s2 }
  0x20   : > { %p1731_p0 = pnand %p2088_p13, %p1729_p12 }
  0x22   : > { %p1732_p3 = pneg %p1731_p0 }
  0x24   : > { %p1737_p7 = pnand %p1735_p5, %p1732_p3 }
  0x26   : > { %1740 = shalt.err (!%p1737_p7)
}
  0x27   : > { %s1741_s13 = scalar_lea.vmem %s2065_s27, 256  ;;  %p1749_p1 = scmp.lt.s32.totalorder %s2065_s27, %s2065_s27 }
  0x28   : > { %p1742_p9 = scmp.ne.s32.totalorder %s2065_s27, %s1741_s13  ;;  %p1750_p4 = scmp.lt.s32.totalorder %s1741_s13, %s1741_s13 }
  0x2a   : > { %p1744_p10 = pnand %p1742_p9, %p2088_p13  ;;  %p1751_p12 = por %p1750_p4, %p1749_p1 }
  0x2c   : > { %p1745_p6 = pneg %p1744_p10 }
  0x2e   : > { %p1752_p0 = pnand %p1751_p12, %p1745_p6 }
  0x30   : > { %1755 = shalt.err (!%p1752_p0)
}
  0x31   : > { %s1937_s24 = smov 64   ;;  %s1938_s19 = smov 4  }
  0x32   : > { %1600 = dma.hbm_to_vmem [thread:$0]  (!%p2072_p11), %s2428_s2, 256, %s2065_s27, [#allocation9], %s1937_s24, %s1937_s24, %s1938_s19  }
  0x33   : > { %s1756_s13 = scalar_lea.hbm %s2430_s4, 256 }
  0x34   : > { %p1757_p1 = scmp.ne.s32.totalorder %s2430_s4, %s1756_s13  ;;  %p1763_p10 = scmp.lt.u32.totalorder %s1756_s13, %s2430_s4 }
  0x36   : > { %p1759_p4 = pnand %p1757_p1, %p2088_p13 }
  0x38   : > { %p1760_p6 = pneg %p1759_p4 }
  0x3a   : > { %p1765_p3 = pnand %p1763_p10, %p1760_p6 }
  0x3c   : > { %1768 = shalt.err (!%p1765_p3)
}
  0x3d   : > { %s1769_s27 = scalar_lea.vmem %s2076_s30, 256  ;;  %p1777_p12 = scmp.lt.s32.totalorder %s2076_s30, %s2076_s30 }
  0x3e   : > { %p1770_p5 = scmp.ne.s32.totalorder %s2076_s30, %s1769_s27  ;;  %p1778_p0 = scmp.lt.s32.totalorder %s1769_s27, %s1769_s27 }
  0x40   : > { %p1772_p7 = pnand %p1770_p5, %p2088_p13  ;;  %p1779_p1 = por %p1778_p0, %p1777_p12 }
  0x42   : > { %p1773_p9 = pneg %p1772_p7 }
  0x44   : > { %p1780_p4 = pnand %p1779_p1, %p1773_p9 }
  0x46   : > { %1783 = shalt.err (!%p1780_p4)
}
  0x47   : > { %1603 = dma.hbm_to_vmem [thread:$0]  (!%p2072_p11), %s2430_s4, 256, %s2076_s30, [#allocation9], %s1937_s24, %s1937_s24, %s1938_s19  }
  0x48   : > { %s1784_s20 = scalar_lea.hbm %s2434_s8, 256 }
  0x49   : > { %p1785_p6 = scmp.ne.s32.totalorder %s2434_s8, %s1784_s20  ;;  %p1791_p5 = scmp.lt.u32.totalorder %s1784_s20, %s2434_s8 }
  0x4b   : > { %p1787_p10 = pnand %p1785_p6, %p2088_p13 }
  0x4d   : > { %p1788_p3 = pneg %p1787_p10 }
  0x4f   : > { %p1793_p7 = pnand %p1791_p5, %p1788_p3 }
  0x51   : > { %1796 = shalt.err (!%p1793_p7)
}
  0x52   : > { %s1797_s27 = scalar_lea.vmem %s346_s12, 256  ;;  %p1805_p1 = scmp.lt.s32.totalorder %s346_s12, %s346_s12 }
  0x53   : > { %p1798_p9 = scmp.ne.s32.totalorder %s346_s12, %s1797_s27  ;;  %p1806_p4 = scmp.lt.s32.totalorder %s1797_s27, %s1797_s27 }
  0x55   : > { %p1800_p12 = pnand %p1798_p9, %p2088_p13  ;;  %p1807_p8 = por %p1806_p4, %p1805_p1 }
  0x57   : > { %p1801_p0 = pneg %p1800_p12 }
  0x59   : > { %p1808_p2 = pnand %p1807_p8, %p1801_p0 }
  0x5b   : > { %1811 = shalt.err (!%p1808_p2)
}
  0x5c   : > { %1606 = dma.hbm_to_vmem [thread:$0]  (!%p2072_p11), %s2434_s8, 256, %s346_s12, [#allocation12], %s1937_s24, %s1937_s24, %s1938_s19  }
  0x5d   : > { %s49_s10 = sadd.s32 1, %s1920_s15  ;;  %s40_s28 = sadd.s32 1, %s1928_s17 }
  0x5e   : > { %p56_p2 = scmp.ne.s32.totalorder %s1920_s15, %s1916_s14  ;;  %p42_p8 = scmp.ge.s32.totalorder %s40_s28, 2 }
  0x5f   : > { %p57_p13 = scmp.eq.s32.totalorder %s1932_s18, 0  ;;  %p2459_p6 = scmp.ne.s32.totalorder %s2452_s22, 0 }
  0x60   : > { %p1618_p3 = scmp.lt.s32.totalorder %s1932_s18, 2  ;;  %s2480_s28 = smov (%p42_p8, %s40_s28), 0 }
  0x61   : > { %p2167_p10 = por %p2459_p6, %p56_p2  ;;  %p58_p5 = por %p57_p13, %p56_p2 }
  0x62   : > { %s362_s9 = sand.u32 1, %s1920_s15   ;;  %s44_s16 = ssub.s32 %s1928_s17, %s2480_s28 }
  0x63   : > { %p47_p7 = scmp.eq.s32.totalorder %s44_s16, 0  ;;  %s1432_s12 = sshll.u32 %s362_s9, 3 }
  0x64   : > { %s1471_s20 = sshll.u32 %s1928_s17, 7  ;;  %s366_s13 = scalar_lea.vmem [#allocation5], %s1432_s12 }
  0x65   : > { %s2179_s26 = scalar_select %p47_p7, %s1920_s15, %s49_s10  }
  0x66   : > { %s2184_s22 = scalar_lea.hbm %s2426_s0, %s1471_s20  ;;  %s375_s27 = sshll.u32 %s366_s13, 4  ;;  %s2186_s27 = int_to_ptr.vmem [resolvable:$true] %s375_s27 }
  0x67   : > { %p2190_p11 = pnand %p1618_p3, %p58_p5  ;;  %s2194_s1 = scalar_lea.sflag [#allocation6], %s362_s9 }
  0x68   : > { %s1812_s10 = scalar_lea.hbm %s2184_s22, 128  ;;  %s1817_s20 = scalar_lea.hbm %s2426_s0, 256 }
  0x69   : > { %p1813_p9 = scmp.ne.s32.totalorder %s2184_s22, %s1812_s10  ;;  %p1814_p12 = pneg %p2190_p11 }
  0x6a   : > { %p1818_p4 = scmp.lt.u32.totalorder %s2184_s22, %s2426_s0  ;;  %p1819_p2 = scmp.lt.u32.totalorder %s1817_s20, %s1812_s10 }
  0x6b   : > { %p1815_p0 = pnand %p1814_p12, %p1813_p9  ;;  %p1821_p13 = scmp.lt.u32.totalorder %s1812_s10, %s2184_s22 }
  0x6c   : > { %p1820_p8 = por %p1819_p2, %p1818_p4 }
  0x6d   : > { %p1816_p1 = pneg %p1815_p0 }
  0x6e   : > { %p1822_p6 = por %p1821_p13, %p1820_p8 }
  0x70   : > { %p1823_p3 = pnand %p1822_p6, %p1816_p1 }
  0x72   : > { %1826 = shalt.err (!%p1823_p3)
}
  0x73   : > { %s1827_s9 = scalar_lea.vmem %s2186_s27, 128  ;;  %s1939_s13 = smov [#allocation5]  }
  0x74   : > { %p1828_p5 = scmp.ne.s32.totalorder %s2186_s27, %s1827_s9  ;;  %s1832_s16 = sshll.u32 %s1939_s13, 4  ;;  %s1833_s16 = int_to_ptr.vmem [resolvable:$false] %s1832_s16 }
  0x75   : > { %s1834_s12 = scalar_lea.vmem %s1833_s16, 256  ;;  %p1835_p0 = scmp.lt.s32.totalorder %s2186_s27, %s1833_s16 }
  0x76   : > { %p1830_p7 = pnand %p1828_p5, %p1814_p12  ;;  %p1836_p4 = scmp.lt.s32.totalorder %s1834_s12, %s1827_s9 }
  0x78   : > { %p1831_p9 = pneg %p1830_p7  ;;  %p1837_p2 = por %p1836_p4, %p1835_p0 }
  0x7a   : > { %p1838_p8 = pnand %p1837_p2, %p1831_p9 }
  0x7c   : > { %1841 = shalt.err (!%p1838_p8)
}
  0x7d   : > { %1610 = dma.hbm_to_vmem [thread:$0]  (!%p2190_p11), %s2184_s22, 128, %s2186_s27, %s2194_s1, %s1937_s24, %s1937_s24, %s1938_s19  }
  0x7e   : > { %p2462_p12 = scmp.ne.s32.totalorder %s2456_s25, 0 }
  0x7f   : > { %s2228_s10 = sand.u32 (!%p2462_p12), 1, %s1916_s14   ;;  %p2463_p1 = scmp.ne.s32.totalorder (!%p2462_p12), %s2453_s23, 0 }
  0x80   : > { %393 = sbr.rel (%p2462_p12) target bundleno = 1466 (0x5ba), region = 60  ;;  %s1436_s20 = sshll.u32 (!%p2462_p12), %s2228_s10, 3 }
  0x81   : > { %s396_s29 = scalar_lea.sflag (!%p2462_p12), [#allocation6], %s2228_s10  ;;  %s399_s11 = scalar_lea.vmem (!%p2462_p12), [#allocation5], %s1436_s20 }
  0x87   : > { %1895 = dma.done.wait (%p2463_p1), %s396_s29, 128  }
  0x88   : > { %1897 = vsyncadd (%p2463_p1), %s396_s29, 4294967168  ;;  %p2464_p13 = scmp.ne.s32.totalorder %s2451_s21, 0 }
  0x8a   : > { %1899 = dma.done.wait (%p2464_p13), [#allocation9], 512  }
  0x8b   : > { %1901 = vsyncadd (%p2464_p13), [#allocation9], 4294966784 }
  0x8c   : > { %1903 = dma.done.wait (%p2464_p13), [#allocation12], 256  }
  0x8d   : > { %1905 = vsyncadd (%p2464_p13), [#allocation12], 4294967040  ;;  %v1940_v0 = vmov 0.0   ;;  %vm1941_vm0 = vmmov 0   ;;  %v1687_v1 = vld [vmem:[#allocation10] sm:$0xff]   ;;  %v1688_v2 = vld [vmem:[#allocation10 + $0x8] sm:$0xff]   ;;  %v683_v47 = vlaneseq }
  0x8e   : > { %1501 = vmatprep.subr.bf16.mxu0 %v1940_v0  ;;  %1505 = vmatprep.mubr.msk.bf16.mxu0 %vm1941_vm0, %v1940_v0  ;;  %v1689_v3 = vld [vmem:[%s399_s11] sm:$0xff]   ;;  %vm463_vm1 = vcmask 261120   ;;  %v1690_v4 = vld [vmem:[#allocation8] sm:$0xff]   ;;  %v1691_v5 = vld [vmem:[#allocation8 + $0x8] sm:$0xff]   ;;  %v1942_v7 = vmov 0   ;;  %vm705_vm2 = vcmask 64512  }
  0x8f   : > { %1509 = vmatprep.subr.bf16.mxu1 %v1940_v0  ;;  %1513 = vmatprep.mubr.msk.bf16.mxu1 %vm1941_vm0, %v1940_v0  ;;  %v1692_v6 = vld [vmem:[%s2432_s6] sm:$0xff]   ;;  %464 = vst.msk [vmem:[#allocation2] sm:$0xff] %vm463_vm1, %v1942_v7  ;;  %465 = vst.msk [vmem:[#allocation3] sm:$0xff] %vm463_vm1, %v1942_v7  ;;  %v1693_v8 = vld [vmem:[%s2432_s6 + $0x8] sm:$0xff]   ;;  %s1943_s1 = smov 112   ;;  %s1944_s9 = smov 120  }
  0x90   : > { %1502 = vmatpush3.bf16.msra.mxu0 %v1687_v1  ;;  %1510 = vmatpush3.bf16.msra.mxu1 %v1692_v6  ;;  %v1441_v9 = vld [vmem:[%s2431_s5] ss:$0 sm:$0xff]  ;;  %s1945_s13 = smov 104   ;;  %s2465_s20 = sld [smem:[#allocation22_spill]]  ;;  %v684_v49 = vshrl.u32 %v683_v47, 7  ;;  %v690_v52 = vand.u32 127, %v683_v47 }
  0x91   : > { %1503 = vmatprep.subr.bf16.mxu0 %v1940_v0  ;;  %1511 = vmatprep.subr.bf16.mxu1 %v1940_v0  ;;  %v1450_v17 = vld [vmem:[%s2429_s3] ss:$0 sm:$0xff]  ;;  %s2466_s29 = sld [smem:[#allocation19_spill]]  ;;  %s2467_s25 = sld [smem:[#allocation21_spill]]  ;;  %v1946_v55 = vmov -1e+30  }
  0x92   : > { %v698_v50 = vsub.s32 0, %v684_v49  ;;  %v685_v54 = vadd.s32 8, %v684_v49  ;;  %vm691_vm4 = vcmp.le.s32.totalorder %v690_v52, %v684_v49  ;;  %vm753_vm9 = vcmask 130048   ;;  %s1947_s19 = smov 8   ;;  %s1948_s22 = smov 16  }
  0x93   : > { %s1949_s27 = smov 24   ;;  %vm952_vm10 = vcmask 130112   ;;  %vm1080_vm11 = vcmask 195712   ;;  %vm1208_vm12 = vcmask 261312   ;;  %s1440_s30 = sshll.u32 %s2228_s10, 4 }
  0x94   : > { %1504 = vmatpush3.bf16.msra.mxu0 %v1688_v2  ;;  %1512 = vmatpush3.bf16.msra.mxu1 %v1693_v8  ;;  %vm692_vm6 = vcmp.le.s32.totalorder %v690_v52, %v685_v54  ;;  %s450_s16 = scalar_lea.vmem [#allocation13], %s1440_s30  ;;  %s2469_s23 = sld [smem:[#allocation24_spill]] }
  0x95   : > { %1517 = vmatprep.subr.bf16.mxu0 %v1940_v0  ;;  %1525 = vmatprep.subr.bf16.mxu1 %v1940_v0  ;;  %s1296_s12 = sshll.u32 %s450_s16, 4  ;;  %s2369_s12 = int_to_ptr.vmem [resolvable:$true] %s1296_s12 }
  0x96   : > { %v1446_v29 = vld [vmem:[%s2465_s20] ss:$0 sm:$0xff] }
  0x97   : > { %1506 = vmatmul.mubr.msk.bf16.vlgmr.msra.gmra.mrb[0].mxu0 %vm463_vm1, %v1689_v3  ;;  %1514 = vmatmul.mubr.msk.bf16.vlgmr.msra.gmra.mrb[0].mxu1 %vm463_vm1, %v1689_v3  ;;  %p452_p11 = scmp.lt.s32.totalorder %s2466_s29, 1  ;;  %s1472_s20 = sshll.u32 %s2466_s29, 8 }
  0x98   : > { %1518 = vmatpush3.bf16.msra.mxu0 %v1690_v4  ;;  %1521 = vmatprep.mubr.msk.bf16.mxu0 %vm1941_vm0, %v1940_v0 }
  0x99   : > { %1519 = vmatprep.subr.bf16.mxu0 %v1940_v0  ;;  %1527 = vmatprep.mubr.msk.bf16.mxu1 %vm1941_vm0, %v1940_v0  ;;  %s453_s11 = scalar_select %p452_p11, %s2466_s29, 1 }
  0x9a   : > { %s1281_s29 = scalar_lea.sflag [#allocation7], %s2228_s10 }
  0x9b   : > { %s454_s24 = scalar_lea.vmem %s2467_s25, %s453_s11  ;;  %s2375_s25 = scalar_lea.hbm %s2469_s23, %s1472_s20 }
  0x9c   : > { %1520 = vmatpush3.bf16.msra.mxu0 %v1691_v5  ;;  %v693_v48 = vld [vmem:[%s454_s24] sm:$0x1]  ;;  %s1842_s24 = scalar_lea.vmem %s2369_s12, 256 }
  0x9d   : > { %1531 = vmatprep.subr.bf16.mxu0 %v1940_v0  ;;  %vm694_vm3 = vcmp.ne.f32.partialorder %v693_v48, 0.0  ;;  %p1843_p6 = scmp.ne.s32.totalorder %s2369_s12, %s1842_s24 }
  0x9e   : > { %v695_v51 = vsel %vm694_vm3, 1, %v1942_v7 }
  0x9f   : > { %1522 = vmatmul.mubr.msk.bf16.vlgmr.msra.gmra.mrb[4].mxu0 %vm463_vm1, %v1689_v3  ;;  %v699_v53 = vrot.slane %v695_v51, %v698_v50  ;;  %p1844_p3 = pnand %p1843_p6, %p2167_p10 }
  0xa0   : > { %1533 = vmatprep.mubr.msk.bf16.mxu0 %vm1941_vm0, %v1940_v0 }
  0xa1   : > { %vm700_vm5 = vcmp.eq.s32.totalorder %v699_v53, 1  ;;  %p1845_p5 = pneg %p1844_p3 }
  0xa2   : > { %vm701_vm7 = vmand %vm691_vm4, %vm700_vm5 }
  0xa3   : > { %vm702_vm8 = vmand %vm692_vm6, %vm700_vm5  ;;  %v703_v56 = vsel %vm701_vm7, 0.0, %v1946_v55 }
  0xa4   : > { %v704_v58 = vsel %vm702_vm8, 0.0, %v1946_v55 }
 0x16a   : > { %v532_v10 = vpop.f32.mrb[0].mxu0  ;;  %v596_v30 = vpop.f32.mrb[0].mxu1 }
 0x16b   : > { %v1507_v11 = vpop.f32.mrb[1].mxu0  ;;  %v533_v13 = vadd.f32 %v1441_v9, %v532_v10  ;;  %v597_v31 = vadd.f32 %v1446_v29, %v596_v30  ;;  %v1515_v32 = vpop.f32.mrb[1].mxu1 }
 0x16c   : > { %v535_v12 = vpop.f32.mrb[2].mxu0  ;;  %v599_v33 = vpop.f32.mrb[2].mxu1 }
 0x16d   : > { %v536_v14 = vadd.f32 %v1441_v9, %v535_v12  ;;  %v1508_v15 = vpop.f32.mrb[3].mxu0  ;;  %v600_v34 = vadd.f32 %v1446_v29, %v599_v33  ;;  %v1516_v35 = vpop.f32.mrb[3].mxu1 }
 0x16f   : > { %v604_v16 = vpack.c.bf16 %v536_v14, %v533_v13  ;;  %v610_v36 = vpack.c.bf16 %v600_v34, %v597_v31 }
 0x171   : > { %609 = vst.msk [vmem:[#allocation2] sm:$0xff] %vm463_vm1, %v604_v16  ;;  %613 = vst.msk [vmem:[#allocation3] sm:$0xff] %vm463_vm1, %v610_v36 }
 0x172   : > { %v671_v18 = vpop.f32.mrb[4].mxu0 }
 0x173   : > { %v672_v19 = vadd.f32 %v1450_v17, %v671_v18  ;;  %v1523_v20 = vpop.f32.mrb[5].mxu0 }
 0x174   : > { %v674_v21 = vpop.f32.mrb[6].mxu0 }
 0x175   : > { %v678_v22 = vmul.f32 0.35355338, %v672_v19  ;;  %v675_v23 = vadd.f32 %v1450_v17, %v674_v21  ;;  %v1524_v24 = vpop.f32.mrb[7].mxu0 }
 0x177   : > { %v679_v25 = vmul.f32 0.35355338, %v675_v23 }
 0x178   : > { %v681_v26 = vld [vmem:[#allocation2] sm:$0xff]  ;;  %v2297_v37 = vld [vmem:[#allocation3] sm:$0xff] }
 0x179   : > { %v680_v27 = vpack.c.bf16 %v679_v25, %v678_v22  ;;  %956 = vrot.lane.b32.xlu1 %v681_v26, %s1943_s1  ;;  %827 = vrot.lane.b32.xlu0 %v681_v26, %s1944_s9  ;;  %v710_v28 = vsel %vm705_vm2, %v681_v26, 0 }
 0x17a   : > { %1526 = vmatpush3.bf16.xpose.msra.mxu1 %v710_v28  ;;  %1532 = vmatpush3.bf16.msra.mxu0 %v2297_v37 }
 0x17b   : > { %1537 = vmatprep.subr.bf16.mxu1 %v1940_v0  ;;  %1543 = vmatprep.subr.bf16.mxu0 %v1940_v0 }
 0x17d   : > { %954 = vrot.lane.b32.xlu1 %v680_v27, %s1943_s1  ;;  %824 = vrot.lane.b32.xlu0 %v680_v27, %s1944_s9 }
 0x181   : > { %1082 = vrot.lane.b32.xlu1 %v680_v27, %s1945_s13  ;;  %1084 = vrot.lane.b32.xlu0 %v681_v26, %s1945_s13 }
 0x182   : > { %1528 = vmatmul.mubr.msk.bf16.vlgmr.msra.gmra.mrb[4].mxu1 %vm705_vm2, %v680_v27 }
 0x183   : > { %1539 = vmatprep.mubr.msk.bf16.mxu1 %vm1941_vm0, %v1940_v0 }
 0x1eb   : > { %v828_v38 = vpop.permute.xlu0 %827  ;;  %v957_v40 = vpop.permute.xlu1 %956 }
 0x1ec   : > { %v833_v39 = vsel %vm705_vm2, %v828_v38, 0  ;;  %v962_v42 = vsel %vm705_vm2, %v957_v40, 0 }
 0x1ed   : > { %1538 = vmatpush3.bf16.xpose.msra.mxu1 %v833_v39 }
 0x1ee   : > { %1549 = vmatprep.subr.bf16.mxu1 %v1940_v0 }
 0x1ef   : > { %v825_v41 = vpop.permute.xlu0 %824  ;;  %v955_v44 = vpop.permute.xlu1 %954 }
 0x1f3   : > { %v1085_v43 = vpop.permute.xlu0 %1084  ;;  %v1083_v46 = vpop.permute.xlu1 %1082 }
 0x1f4   : > { %1540 = vmatmul.mubr.msk.bf16.vlgmr.msra.gmra.mrb[8].mxu1 %vm705_vm2, %v825_v41  ;;  %v1090_v45 = vsel %vm705_vm2, %v1085_v43, 0 }
 0x1f5   : > { %1550 = vmatpush3.bf16.xpose.msra.mxu1 %v962_v42  ;;  %1551 = vmatprep.mubr.msk.bf16.mxu1 %vm1941_vm0, %v1940_v0 }
 0x1f6   : > { %1561 = vmatprep.subr.bf16.mxu1 %v1940_v0 }
 0x1fc   : > { %1552 = vmatmul.mubr.msk.bf16.vlgmr.msra.gmra.mrb[12].mxu1 %vm705_vm2, %v955_v44 }
 0x1fd   : > { %1562 = vmatpush3.bf16.xpose.msra.mxu1 %v1090_v45  ;;  %1563 = vmatprep.mubr.msk.bf16.mxu1 %vm1941_vm0, %v1940_v0 }
 0x1fe   : > { %1573 = vmatprep.subr.bf16.mxu1 %v1940_v0 }
 0x204   : > { %1564 = vmatmul.mubr.msk.bf16.vlgmr.msra.gmra.mrb[16].mxu1 %vm705_vm2, %v1083_v46 }
 0x205   : > { %1577 = vmatprep.mubr.msk.bf16.mxu1 %vm1941_vm0, %v1940_v0 }
 0x255   : > { %v746_v57 = vpop.f32.mrb[4].mxu1 }
 0x256   : > { %v747_v59 = vadd.f32 %v746_v57, %v703_v56  ;;  %v1529_v60 = vpop.f32.mrb[5].mxu1 }
 0x257   : > { %v749_v61 = vpop.f32.mrb[6].mxu1 }
 0x258   : > { %v750_v62 = vadd.f32 %v749_v61, %v704_v58  ;;  %v1530_v63 = vpop.f32.mrb[7].mxu1  ;;  %v754_v1 = vsel %vm753_vm9, %v747_v59, -inf }
 0x259   : > { %755 = vmax.xlane.f32.xlu0 %v754_v1 }
 0x25a   : > { %v757_v2 = vsel %vm753_vm9, %v750_v62, -inf }
 0x25b   : > { %758 = vmax.xlane.f32.xlu1 %v757_v2 }
 0x26c   : > { %896 = vrot.lane.b32.xlu1 %v2297_v37, %s1944_s9 }
 0x2c7   : > { %v869_v3 = vpop.f32.mrb[8].mxu1 }
 0x2c8   : > { %v870_v4 = vadd.f32 %v869_v3, %v703_v56  ;;  %v1541_v5 = vpop.f32.mrb[9].mxu1 }
 0x2c9   : > { %v872_v6 = vpop.f32.mrb[10].mxu1 }
 0x2ca   : > { %v873_v7 = vadd.f32 %v872_v6, %v704_v58  ;;  %v1542_v8 = vpop.f32.mrb[11].mxu1  ;;  %v876_v9 = vsel %vm753_vm9, %v870_v4, -inf }
 0x2cb   : > { %877 = vmax.xlane.f32.xlu0 %v876_v9 }
 0x2cc   : > { %v879_v10 = vsel %vm753_vm9, %v873_v7, -inf }
 0x2cf   : > { %880 = vmax.xlane.f32.xlu0 %v879_v10  ;;  %v998_v11 = vpop.f32.mrb[12].mxu1 }
 0x2d0   : > { %v999_v12 = vadd.f32 %v998_v11, %v703_v56  ;;  %v1553_v13 = vpop.f32.mrb[13].mxu1 }
 0x2d1   : > { %v1001_v14 = vpop.f32.mrb[14].mxu1 }
 0x2d2   : > { %v1002_v15 = vadd.f32 %v1001_v14, %v704_v58  ;;  %v1554_v16 = vpop.f32.mrb[15].mxu1  ;;  %v1005_v17 = vsel %vm753_vm9, %v999_v12, -inf }
 0x2d3   : > { %1006 = vmax.xlane.f32.xlu1 %v1005_v17 }
 0x2d4   : > { %v1008_v18 = vsel %vm753_vm9, %v1002_v15, -inf }
 0x2d5   : > { %1009 = vmax.xlane.f32.xlu0 %v1008_v18 }
 0x2d7   : > { %v1126_v19 = vpop.f32.mrb[16].mxu1 }
 0x2d8   : > { %v1127_v20 = vadd.f32 %v1126_v19, %v703_v56  ;;  %v1565_v21 = vpop.f32.mrb[17].mxu1 }
 0x2d9   : > { %v1129_v22 = vpop.f32.mrb[18].mxu1 }
 0x2da   : > { %v1130_v23 = vadd.f32 %v1129_v22, %v704_v58  ;;  %v1566_v24 = vpop.f32.mrb[19].mxu1  ;;  %v1133_v25 = vsel %vm753_vm9, %v1127_v20, -inf }
 0x2db   : > { %1134 = vmax.xlane.f32.xlu1 %v1133_v25 }
 0x2dc   : > { %v1136_v26 = vsel %vm753_vm9, %v1130_v23, -inf }
 0x2dd   : > { %1137 = vmax.xlane.f32.xlu0 %v1136_v26 }
 0x2e6   : > { %v756_v27 = vpop.xlane.xlu0 %755 }
 0x2e7   : > { %v760_v28 = vsub.f32 %v747_v59, %v756_v27 }
 0x2e8   : > { %v759_v29 = vpop.xlane.xlu1 %758 }
 0x2e9   : > { %v762_v30 = vmul.f32 1.442695, %v760_v28  ;;  %v761_v31 = vsub.f32 %v750_v62, %v759_v29 }
 0x2eb   : > { %v764_v32 = vmul.f32 1.442695, %v761_v31  ;;  %1696 = vpow2.f32 %v762_v30 }
 0x2ec   : > { %1152 = vrot.lane.b32.xlu1 %v2297_v37, %s1945_s13  ;;  %v897_v36 = vpop.permute.xlu1 %896  ;;  %s2468_s13 = sld [smem:[#allocation23_spill]] }
 0x2ed   : > { %1698 = vpow2.f32 %v764_v32 }
 0x2f3   : > { %1024 = vrot.lane.b32.xlu0 %v2297_v37, %s1943_s1 }
 0x2f5   : > { %v1697_v33 = vpop.eup %1696 }
 0x2f6   : > { %v766_v8 = vsel %vm753_vm9, %v1697_v33, 0.0 }
 0x2f7   : > { %v2336_v34 = vpop.eup %1698 }
 0x2f8   : > { %v772_v35 = vpack.c.bf16 %v2336_v34, %v1697_v33  ;;  %v769_v10 = vsel %vm753_vm9, %v2336_v34, 0.0 }
 0x2fa   : > { %1534 = vmatmul.mubr.msk.bf16.vlgmr.msra.gmra.mrb[8].mxu0 %vm753_vm9, %v772_v35 }
 0x2fb   : > { %1544 = vmatpush3.bf16.msra.mxu0 %v897_v36  ;;  %1545 = vmatprep.mubr.msk.bf16.mxu0 %vm1941_vm0, %v1940_v0 }
 0x2fc   : > { %1555 = vmatprep.subr.bf16.mxu0 %v1940_v0 }
 0x358   : > { %v878_v38 = vpop.xlane.xlu0 %877 }
 0x359   : > { %v882_v39 = vsub.f32 %v870_v4, %v878_v38 }
 0x35b   : > { %v884_v40 = vmul.f32 1.442695, %v882_v39 }
 0x35c   : > { %v881_v41 = vpop.xlane.xlu0 %880 }
 0x35d   : > { %1700 = vpow2.f32 %v884_v40  ;;  %v883_v37 = vsub.f32 %v873_v7, %v881_v41 }
 0x35f   : > { %v886_v42 = vmul.f32 1.442695, %v883_v37 }
 0x360   : > { %v1007_v43 = vpop.xlane.xlu1 %1006 }
 0x361   : > { %1702 = vpow2.f32 %v886_v42  ;;  %v1011_v44 = vsub.f32 %v999_v12, %v1007_v43  ;;  %v1694_v42 = vld [vmem:[#allocation11] sm:$0xff]  }
 0x362   : > { %v1010_v45 = vpop.xlane.xlu0 %1009  ;;  %1574 = vmatpush3.bf16.msra.mxu1 %v1694_v42 }
 0x363   : > { %v1013_v46 = vmul.f32 1.442695, %v1011_v44  ;;  %v1012_v47 = vsub.f32 %v1002_v15, %v1010_v45  ;;  %1575 = vmatprep.subr.bf16.mxu1 %v1940_v0 }
 0x365   : > { %1704 = vpow2.f32 %v1013_v46  ;;  %v1015_v48 = vmul.f32 1.442695, %v1012_v47  ;;  %v1695_v46 = vld [vmem:[#allocation11 + $0x8] sm:$0xff]  }
 0x366   : > { %1576 = vmatpush3.bf16.msra.mxu1 %v1695_v46 }
 0x367   : > { %v1701_v49 = vpop.eup %1700  ;;  %1706 = vpow2.f32 %v1015_v48 }
 0x368   : > { %v1135_v50 = vpop.xlane.xlu1 %1134  ;;  %v888_v51 = vsel %vm753_vm9, %v1701_v49, 0.0 }
 0x369   : > { %v1139_v52 = vsub.f32 %v1127_v20, %v1135_v50  ;;  %889 = vadd.xlane.f32.xlu1 %v888_v51 }
 0x36a   : > { %v1138_v53 = vpop.xlane.xlu0 %1137 }
 0x36b   : > { %v1703_v54 = vpop.eup %1702  ;;  %v1141_v55 = vmul.f32 1.442695, %v1139_v52  ;;  %v1140_v56 = vsub.f32 %v1130_v23, %v1138_v53 }
 0x36c   : > { %v891_v57 = vsel %vm753_vm9, %v1703_v54, 0.0  ;;  %v894_v58 = vpack.c.bf16 %v1703_v54, %v1701_v49  ;;  %v1153_v3 = vpop.permute.xlu1 %1152 }
 0x36d   : > { %1708 = vpow2.f32 %v1141_v55  ;;  %v1143_v59 = vmul.f32 1.442695, %v1140_v56  ;;  %892 = vadd.xlane.f32.xlu0 %v891_v57 }
 0x36e   : > { %1546 = vmatmul.mubr.msk.bf16.vlgmr.msra.gmra.mrb[12].mxu0 %vm753_vm9, %v894_v58  ;;  %v1025_v60 = vpop.permute.xlu0 %1024 }
 0x36f   : > { %v1705_v61 = vpop.eup %1704  ;;  %1710 = vpow2.f32 %v1143_v59  ;;  %1556 = vmatpush3.bf16.msra.mxu0 %v1025_v60  ;;  %1557 = vmatprep.mubr.msk.bf16.mxu0 %vm1941_vm0, %v1940_v0  ;;  %v1462_v60 = vld [vmem:[%s2468_s13] ss:$0 sm:$0xff] }
 0x370   : > { %v1017_v62 = vsel %vm753_vm9, %v1705_v61, 0.0  ;;  %1567 = vmatprep.subr.bf16.mxu0 %v1940_v0 }
 0x371   : > { %v1707_v63 = vpop.eup %1706  ;;  %1018 = vadd.xlane.f32.xlu0 %v1017_v62 }
 0x372   : > { %v1020_v1 = vsel %vm753_vm9, %v1707_v63, 0.0  ;;  %v1023_v2 = vpack.c.bf16 %v1707_v63, %v1705_v61 }
 0x373   : > { %1021 = vadd.xlane.f32.xlu1 %v1020_v1 }
 0x376   : > { %1558 = vmatmul.mubr.msk.bf16.vlgmr.msra.gmra.mrb[16].mxu0 %vm753_vm9, %v1023_v2 }
 0x377   : > { %v1709_v4 = vpop.eup %1708  ;;  %1568 = vmatpush3.bf16.msra.mxu0 %v1153_v3  ;;  %1569 = vmatprep.mubr.msk.bf16.mxu0 %vm1941_vm0, %v1940_v0 }
 0x378   : > { %v1145_v5 = vsel %vm753_vm9, %v1709_v4, 0.0 }
 0x379   : > { %v1711_v6 = vpop.eup %1710  ;;  %1146 = vadd.xlane.f32.xlu0 %v1145_v5 }
 0x37a   : > { %v1148_v7 = vsel %vm753_vm9, %v1711_v6, 0.0  ;;  %v1151_v9 = vpack.c.bf16 %v1711_v6, %v1709_v4 }
 0x37b   : > { %1149 = vadd.xlane.f32.xlu1 %v1148_v7 }
 0x37d   : > { %767 = vadd.xlane.f32.xlu0 %v766_v8 }
 0x37e   : > { %1570 = vmatmul.mubr.msk.bf16.vlgmr.msra.gmra.mrb[20].mxu0 %vm753_vm9, %v1151_v9 }
 0x37f   : > { %770 = vadd.xlane.f32.xlu1 %v769_v10 }
 0x3cd   : > { %v810_v11 = vpop.f32.mrb[8].mxu0 }
 0x3ce   : > { %v1535_v12 = vpop.f32.mrb[9].mxu0 }
 0x3cf   : > { %v813_v13 = vpop.f32.mrb[10].mxu0 }
 0x3d0   : > { %v1536_v14 = vpop.f32.mrb[11].mxu0 }
 0x3f6   : > { %v890_v16 = vpop.xlane.xlu1 %889 }
 0x3fa   : > { %v893_v15 = vpop.xlane.xlu0 %892 }
 0x3fe   : > { %v1019_v17 = vpop.xlane.xlu0 %1018 }
 0x400   : > { %v1022_v18 = vpop.xlane.xlu1 %1021 }
 0x406   : > { %v1147_v19 = vpop.xlane.xlu0 %1146 }
 0x408   : > { %v1150_v20 = vpop.xlane.xlu1 %1149 }
 0x40a   : > { %v768_v21 = vpop.xlane.xlu0 %767 }
 0x40b   : > { %1712 = vrcp.f32 %v768_v21 }
 0x40c   : > { %v771_v22 = vpop.xlane.xlu1 %770 }
 0x40d   : > { %1714 = vrcp.f32 %v771_v22 }
 0x40e   : > { %1716 = vrcp.f32 %v890_v16 }
 0x40f   : > { %1718 = vrcp.f32 %v893_v15 }
 0x410   : > { %1720 = vrcp.f32 %v1019_v17 }
 0x411   : > { %1722 = vrcp.f32 %v1022_v18 }
 0x412   : > { %1724 = vrcp.f32 %v1147_v19 }
 0x413   : > { %1726 = vrcp.f32 %v1150_v20 }
 0x415   : > { %v1713_v23 = vpop.eup %1712 }
 0x416   : > { %v819_v25 = vmul.f32 %v1713_v23, %v810_v11 }
 0x417   : > { %v1715_v24 = vpop.eup %1714 }
 0x418   : > { %v820_v26 = vmul.f32 %v1715_v24, %v813_v13  ;;  %v1717_v29 = vpop.eup %1716 }
 0x419   : > { %v1719_v31 = vpop.eup %1718 }
 0x41a   : > { %v821_v27 = vpack.c.bf16 %v820_v26, %v819_v25  ;;  %v1721_v39 = vpop.eup %1720 }
 0x41b   : > { %v1723_v41 = vpop.eup %1722 }
 0x41c   : > { %822 = vst.msk [vmem:[#allocation4] sm:$0xff] %vm705_vm2, %v821_v27  ;;  %v1725_v48 = vpop.eup %1724 }
 0x41d   : > { %v1727_v52 = vpop.eup %1726 }
 0x441   : > { %v936_v28 = vpop.f32.mrb[12].mxu0 }
 0x442   : > { %v1547_v30 = vpop.f32.mrb[13].mxu0  ;;  %v945_v33 = vmul.f32 %v1717_v29, %v936_v28 }
 0x443   : > { %v939_v32 = vpop.f32.mrb[14].mxu0 }
 0x444   : > { %v946_v34 = vmul.f32 %v1719_v31, %v939_v32  ;;  %v1548_v35 = vpop.f32.mrb[15].mxu0 }
 0x446   : > { %v947_v36 = vpack.c.bf16 %v946_v34, %v945_v33 }
 0x448   : > { %949 = vrot.lane.b32.xlu0 %v947_v36, %s1947_s19 }
 0x449   : > { %v1064_v38 = vpop.f32.mrb[16].mxu0 }
 0x44a   : > { %v1559_v40 = vpop.f32.mrb[17].mxu0  ;;  %v1073_v43 = vmul.f32 %v1721_v39, %v1064_v38 }
 0x44b   : > { %v1067_v37 = vpop.f32.mrb[18].mxu0 }
 0x44c   : > { %v1074_v44 = vmul.f32 %v1723_v41, %v1067_v37  ;;  %v1560_v45 = vpop.f32.mrb[19].mxu0 }
 0x44e   : > { %v1075_v47 = vpack.c.bf16 %v1074_v44, %v1073_v43 }
 0x450   : > { %1077 = vrot.lane.b32.xlu1 %v1075_v47, %s1948_s22  ;;  %s1950_s22 = smov [#allocation13]  }
 0x451   : > { %v1192_v49 = vpop.f32.mrb[20].mxu0 }
 0x452   : > { %v1201_v50 = vmul.f32 %v1725_v48, %v1192_v49  ;;  %v1571_v51 = vpop.f32.mrb[21].mxu0 }
 0x453   : > { %v1195_v53 = vpop.f32.mrb[22].mxu0 }
 0x454   : > { %v1202_v54 = vmul.f32 %v1727_v52, %v1195_v53  ;;  %v1572_v55 = vpop.f32.mrb[23].mxu0 }
 0x456   : > { %v1203_v56 = vpack.c.bf16 %v1202_v54, %v1201_v50 }
 0x458   : > { %1205 = vrot.lane.b32.xlu1 %v1203_v56, %s1949_s27  ;;  %s1846_s27 = sshll.u32 %s1950_s22, 4  ;;  %s1847_s27 = int_to_ptr.vmem [resolvable:$false] %s1846_s27 }
 0x459   : > { %s1848_s30 = scalar_lea.vmem %s1847_s27, 512  ;;  %p1849_p7 = scmp.lt.s32.totalorder %s2369_s12, %s1847_s27 }
 0x45a   : > { %p1850_p9 = scmp.lt.s32.totalorder %s1848_s30, %s1842_s24 }
 0x45c   : > { %p1851_p0 = por %p1850_p9, %p1849_p7 }
 0x45e   : > { %p1852_p4 = pnand %p1851_p0, %p1845_p5 }
 0x4ba   : > { %v950_v57 = vpop.permute.xlu0 %949 }
 0x4bb   : > { %953 = vst.msk [vmem:[#allocation4] sm:$0xff] %vm952_vm10, %v950_v57 }
 0x4c2   : > { %v1078_v0 = vpop.permute.xlu1 %1077 }
 0x4c3   : > { %1081 = vst.msk [vmem:[#allocation4] sm:$0xff] %vm1080_vm11, %v1078_v0 }
 0x4ca   : > { %v1206_v58 = vpop.permute.xlu1 %1205 }
 0x4cb   : > { %1209 = vst.msk [vmem:[#allocation4] sm:$0xff] %vm1208_vm12, %v1206_v58 }
 0x4d2   : > { %v1210_v59 = vld [vmem:[#allocation4] sm:$0xff] }
 0x4d3   : > { %1578 = vmatmul.mubr.msk.bf16.vlgmr.msra.gmra.mrb[20].mxu1 %vm463_vm1, %v1210_v59 }
 0x5a6   : > { %v1271_v61 = vpop.f32.mrb[20].mxu1 }
 0x5a7   : > { %v1272_v62 = vadd.f32 %v1462_v60, %v1271_v61  ;;  %v1579_v63 = vpop.f32.mrb[21].mxu1 }
 0x5a8   : > { %v1274_v1 = vpop.f32.mrb[22].mxu1 }
 0x5a9   : > { %1278 = vst.msk [vmem:[%s450_s16] sm:$0xff] %vm463_vm1, %v1272_v62  ;;  %v1275_v2 = vadd.f32 %v1462_v60, %v1274_v1  ;;  %v1580_v3 = vpop.f32.mrb[23].mxu1 }
 0x5ab   : > { %1279 = vst.msk [vmem:[%s450_s16 + $0x8] sm:$0xff] %vm463_vm1, %v1275_v2 }
 0x5ac   : > { %1855 = shalt.err (!%p1852_p4)
}
 0x5ad   : > { %s1856_s1 = scalar_lea.hbm %s2375_s25, 256  ;;  %s1860_s16 = scalar_lea.hbm %s2469_s23, 512 }
 0x5ae   : > { %p1857_p2 = scmp.ne.s32.totalorder %s2375_s25, %s1856_s1  ;;  %p1861_p1 = scmp.lt.u32.totalorder %s2375_s25, %s2469_s23 }
 0x5af   : > { %p1862_p13 = scmp.lt.u32.totalorder %s1860_s16, %s1856_s1  ;;  %p1864_p6 = scmp.lt.u32.totalorder %s1856_s1, %s2375_s25 }
 0x5b0   : > { %p1858_p8 = pnand %p1857_p2, %p2167_p10 }
 0x5b1   : > { %p1863_p11 = por %p1862_p13, %p1861_p1 }
 0x5b2   : > { %p1859_p12 = pneg %p1858_p8 }
 0x5b3   : > { %p1865_p3 = por %p1864_p6, %p1863_p11 }
 0x5b5   : > { %p1866_p5 = pnand %p1865_p3, %p1859_p12 }
 0x5b7   : > { %1869 = shalt.err (!%p1866_p5)
}
 0x5b8   : > { %s1951_s21 = smov 128  }
 0x5b9   : > { %1595 = dma.vmem_to_hbm [thread:$0]  (%p2167_p10), %s2369_s12, 256, %s2375_s25, %s1281_s29, %s1951_s21, %s1951_s21, %s1947_s19  }
 0x5ba PF: > { %s2470_s24 = sld [smem:[#allocation18_spill]]  ;;  %s2471_s22 = sld [smem:[#allocation20_spill]] }
 0x5bb   : > { %p2473_p9 = scmp.ge.s32.totalorder %s1932_s18, 2 }
 0x5c0   : > { %s1311_s27 = sand.u32 1, %s2470_s24   ;;  %p2472_p7 = scmp.ne.s32.totalorder %s2471_s22, 0 }
 0x5c1   : > { %s1312_s30 = scalar_lea.sflag [#allocation7], %s1311_s27 }
 0x5c2   : > { %p1612_p0 = pnand %p2473_p9, %p2472_p7 }
 0x5c4   : > { %1907 = dma.done.wait (!%p1612_p0), %s1312_s30, 256  }
 0x5c5   : > { %1909 = vsyncadd (!%p1612_p0), %s1312_s30, 4294967040  ;;  %s28_s18 = sadd.s32 1, %s1932_s18   ;;  %s2474_s13 = smov %s1916_s14 }
 0x5c6   : > { %p25_p4 = scmp.ge.s32.totalorder %s28_s18, 4   ;;  %s2475_s14 = smov %s1920_s15 }
 0x5c7   : > { %s2476_s15 = smov %s2179_s26  ;;  %s2477_s16 = smov %s1928_s17 }
 0x5c8   : > { %s2478_s17 = smov %s2480_s28  ;;  %27 = sbr.rel (!%p25_p4) target bundleno = 13 (0xd), region = 126 }
 0x5cf   :  { %1317 = vsyncpa [#allocation6], 1 }
 0x5d0   :  { %1319 = vsyncpa [#allocation6 + $0x1], 1 }
 0x5d1   :  { %1320 = vsyncpa [#allocation9], 1 }
 0x5d2   :  { %1321 = vsyncpa [#allocation12], 1 }
 0x5d3   :  { %1322 = vsyncpa [#allocation7], 1 }
 0x5d4   :  { %1324 = vsyncpa [#allocation7 + $0x1], 1 }

</bundles_post_ra>
